<compile_context>
chip_gen: v7x
topology: tpu7x:2x2x1
jax: 0.10.0
libtpu: 0.0.40
codegen_flags: <defaults>
</compile_context>

<pallas_src>
import numpy as np
import jax
import jax.numpy as jnp
from jax.experimental import pallas as pl
from jax.experimental.pallas import tpu as pltpu

EPS = 1e-5  # BatchNorm eps (PyTorch default)


# ------------------------------ fused kernel -------------------------------- #

def make_pae_kernel(n_valid, reps1, reps2):
    """Build the fused kernel with compile-time constants closed over."""

    def kernel(x_ref, eps_ref, wenc_ref, sel_ref, vecs_ref,
               wml_ref, wdl_ref, wct_ref, wout_ref,
               recon_ref, mulv_ref):
        hidden = sel_ref.shape[1]
        latent = eps_ref.shape[1]

        # packed small vectors: one DMA, sliced in-register
        vecs = vecs_ref[...]
        bn1_g = vecs[0:1, :hidden]
        bn1_b = vecs[1:2, :hidden]
        bn2_g = vecs[2:3, :hidden]
        bn2_b = vecs[3:4, :hidden]
        b_ml = vecs[4:5, :2 * latent]
        b_dl = vecs[5:6, :wdl_ref.shape[1]]
        b_out = vecs[6:7, :wout_ref.shape[1]]

        def dot(a, b):
            return jnp.dot(a, b, preferred_element_type=jnp.float32)

        def bn_gelu(a, gamma, beta, reps):
            # BatchNorm (training batch stats, biased var) over columns laid out as
            # (spatial-major, channel-minor). Channel reduce goes through the 0/1
            # selection matrix (plain matmul, no reshapes); broadcast back is a pure
            # lane-repeat (jnp.tile) since the layout is channel-minor.
            # Padded batch rows are masked out of the statistics.
            rowid = jax.lax.broadcasted_iota(jnp.int32, a.shape, 0)
            am = jnp.where(rowid < n_valid, a, 0.0)
            count = n_valid * reps
            csum = dot(jnp.sum(am, axis=0, keepdims=True), sel_ref[...])       # (1, H)
            csq = dot(jnp.sum(am * am, axis=0, keepdims=True), sel_ref[...])   # (1, H)
            mean = csum * (1.0 / count)
            var = csq * (1.0 / count) - mean * mean
            scale = jax.lax.rsqrt(var + EPS) * gamma
            shift = beta - mean * scale
            y = a * jnp.tile(scale, (1, reps)) + jnp.tile(shift, (1, reps))
            # exact GELU (PyTorch nn.GELU default)
            return 0.5 * y * (1.0 + jax.lax.erf(y * (2.0 ** -0.5)))

        # encoder: Conv1d(k=3, same) as one dense (C*L, L*H) matmul -> BN1d -> GELU
        lat = bn_gelu(dot(x_ref[...], wenc_ref[...]), bn1_g, bn1_b, reps1)     # (N, L*H)

        # fused mu|logvar head (PyTorch NCL flatten order pre-folded into weight rows)
        ml = dot(lat, wml_ref[...]) + b_ml                                     # (N, 2*lat)
        mulv_ref[...] = ml
        mu = ml[:, :latent]
        logvar = ml[:, latent:]

        # reparameterize
        z = mu + jnp.exp(0.5 * logvar) * eps_ref[...]

        # decoder Linear (Unflatten + NCHW->NHWC permutation pre-folded into columns)
        d = dot(z, wdl_ref[...]) + b_dl                                        # (N, P*H)

        # ConvTranspose2d(k=3, s=1, p=1) as one dense (P*H, P*H) matmul -> BN2d -> GELU
        d = bn_gelu(dot(d, wct_ref[...]), bn2_g, bn2_b, reps2)                 # (N, P*H)

        # final Conv2d(k=3, same) + bias + Tanh; columns already NCHW-flat, zero-padded
        # to a full 128-lane width so the store is an unmasked vst.
        recon_ref[...] = jnp.tanh(dot(d, wout_ref[...]) + b_out)

    return kernel


# --------------------------------- init ------------------------------------- #

def _ceil_to(x, m):
    return -(-x // m) * m


def init_params(key, in_channels, in_size, latent_dim):
    hidden = latent_dim                          # default hidden_dims = [latent_dim]
    L = in_size
    enc_size = int(round(L ** 0.5))
    assert enc_size * enc_size == L, "choose in_size = enc_size**2 so Linear in-features match"
    dec = enc_size
    P = dec * dec                                # == L
    feat = hidden * enc_size ** 2                # mu/logvar in-features
    dfeat = hidden * P                           # decoder-linear out-features
    out_cols = in_channels * P                   # true recon columns (NCHW-flat)
    out_pad = _ceil_to(out_cols, 128)            # lane-dense padded recon columns

    ks = jax.random.split(key, 8)

    def normal(k, shape, std):
        return np.asarray(std * jax.random.normal(k, shape, jnp.float32))

    def xavier(k, shape, fan_in, fan_out):
        return normal(k, shape, (2.0 / (fan_in + fan_out)) ** 0.5)

    # --- encoder Conv1d(C_in -> H, k=3, same); PyTorch-style init, bias dropped (BN) ---
    std1 = 1.0 / (3 * in_channels) ** 0.5
    w_enc = normal(ks[0], (hidden, in_channels, 3), std1)          # PyTorch (out, in, k)
    # dense conv-as-matmul: rows = PyTorch NCL flatten (c*L + l_in),
    #                       cols = spatial-major / channel-minor (l_out*H + h)
    w_enc_dense = np.zeros((in_channels * L, L * hidden), np.float32)
    for l_out in range(L):
        for k in range(3):
            l_in = l_out + k - 1
            if 0 <= l_in < L:
                w_enc_dense[l_in::L, l_out * hidden:(l_out + 1) * hidden] = w_enc[:, :, k].T

    # --- BN channel-selection matrix (shared by BN1d and BN2d since L*H == P*H) ---
    s_sel = np.zeros((L * hidden, hidden), np.float32)
    s_sel[np.arange(L * hidden), np.arange(L * hidden) % hidden] = 1.0

    # --- fused mu|logvar Linear (xavier_normal, bias=0.01); stored transposed (in, out)
    #     with rows permuted to absorb the PyTorch channel-major (N, H, L) flatten ---
    perm_enc = (np.arange(feat) % hidden) * L + (np.arange(feat) // hidden)
    w_mu = xavier(ks[1], (feat, latent_dim), feat, latent_dim)[perm_enc, :]
    w_lv = xavier(ks[2], (feat, latent_dim), feat, latent_dim)[perm_enc, :]
    w_mulv = np.concatenate([w_mu, w_lv], axis=1)                  # (feat, 2*latent)

    # --- decoder Linear(latent -> H*dec*dec) (xavier_normal, bias=0.01); columns
    #     permuted so the output comes out directly in NHWC-flat (p*H + c) order ---
    perm_dec = (np.arange(dfeat) % hidden) * P + (np.arange(dfeat) // hidden)
    w_dl = xavier(ks[3], (latent_dim, dfeat), latent_dim, dfeat)[:, perm_dec]

    # --- ConvTranspose2d(H, H, 3, s=1, p=1) == same-conv with spatially-flipped kernel;
    #     PyTorch default init, bias dropped (cancelled by BN) ---
    stdt = 1.0 / (9 * hidden) ** 0.5
    wt = normal(ks[4], (hidden, hidden, 3, 3), stdt)               # (Cin, Cout, kh, kw)
    w_conv = np.transpose(wt[:, :, ::-1, ::-1], (1, 0, 2, 3))      # (Cout, Cin, kh, kw)
    # --- final Conv2d(H -> C_in, 3, same, bias): xavier_normal weight ---
    wc = xavier(ks[5], (in_channels, hidden, 3, 3), hidden * 9, in_channels * 9)
    # TODO(synk): PyTorch Conv2d default bias is uniform(+-1/sqrt(fan_in)); Gaussian of
    # the same scale used here (init-level mismatch only, forward math unaffected).
    b_out = normal(ks[6], (in_channels,), stdt)

    w_ct_dense = np.zeros((P * hidden, P * hidden), np.float32)
    w_out_core = np.zeros((P * hidden, out_cols), np.float32)
    for i_out in range(dec):
        for j_out in range(dec):
            p_out = i_out * dec + j_out
            for kh in range(3):
                for kw in range(3):
                    i_in, j_in = i_out + kh - 1, j_out + kw - 1
                    if 0 <= i_in < dec and 0 <= j_in < dec:
                        p_in = i_in * dec + j_in
                        w_ct_dense[p_in * hidden:(p_in + 1) * hidden,
                                   p_out * hidden:(p_out + 1) * hidden] = w_conv[:, :, kh, kw].T
                        # recon columns in NCHW-flat order: co*P + p_out
                        w_out_core[p_in * hidden:(p_in + 1) * hidden,
                                   p_out::P] = wc[:, :, kh, kw].T
    # zero-pad recon columns to a full 128-lane multiple (sliced off in the wrapper)
    w_out_dense = np.zeros((P * hidden, out_pad), np.float32)
    w_out_dense[:, :out_cols] = w_out_core

    # --- pack all tiny vectors (BN affines + biases) into one (8, W) operand ---
    W = _ceil_to(max(hidden, 2 * latent_dim, dfeat, out_pad, 128), 128)
    vecs = np.zeros((8, W), np.float32)
    vecs[0, :hidden] = 1.0                        # bn1 gamma
    # vecs[1] bn1 beta = 0
    vecs[2, :hidden] = 1.0                        # bn2 gamma
    # vecs[3] bn2 beta = 0
    vecs[4, :2 * latent_dim] = 0.01               # b_mu | b_logvar
    vecs[5, :dfeat] = 0.01                        # b_decoder_linear (constant -> perm no-op)
    vecs[6, :out_cols] = np.repeat(b_out, P)      # b_out in NCHW-flat order, zero-padded
    # vecs[7] unused (sublane padding)

    params = {k: jnp.asarray(v) for k, v in dict(
        w_enc_dense=w_enc_dense, s_sel=s_sel, vecs=vecs,
        w_mulv=w_mulv, w_dl=w_dl, w_ct_dense=w_ct_dense,
        w_out_dense=w_out_dense).items()}
    meta = dict(hidden=hidden, latent=latent_dim, dec=dec,
                in_channels=in_channels, L=L, out_pad=out_pad)
    return params, meta


# -------------------------------- wrapper ------------------------------------ #

def pae_forward(params, meta, x_ncl, eps):
    N, C_in, L = x_ncl.shape
    dec, latent, hidden = meta["dec"], meta["latent"], meta["hidden"]
    out_pad = meta["out_pad"]
    P = dec * dec
    out_cols = C_in * P

    # pad batch to a multiple of 8 rows (f32 sublane granularity); BN statistics inside
    # the kernel are masked to the true batch, so results are identical to unpadded.
    N_pad = max(8, _ceil_to(N, 8))
    x_flat = x_ncl.reshape(N, C_in * L)            # PyTorch NCL flatten (c*L + l)
    x_pad = jnp.pad(x_flat, ((0, N_pad - N), (0, 0)))
    eps_pad = jnp.pad(eps, ((0, N_pad - N), (0, 0)))

    kernel = make_pae_kernel(n_valid=N, reps1=L, reps2=P)

    args = (x_pad, eps_pad,
            params["w_enc_dense"], params["s_sel"], params["vecs"],
            params["w_mulv"], params["w_dl"], params["w_ct_dense"], params["w_out_dense"])

    # advisory cost estimate (lets XLA schedule around this latency-bound call)
    flops = (2 * N_pad * (C_in * L) * (L * hidden)        # encoder conv
             + 2 * N_pad * (L * hidden) * (2 * latent)    # fused mu|logvar head
             + 2 * N_pad * latent * (hidden * P)          # decoder linear
             + 2 * N_pad * (P * hidden) * (P * hidden)    # convT
             + 2 * N_pad * (P * hidden) * out_pad         # final conv
             + 4 * 2 * (L * hidden) * hidden)             # BN channel reductions
    transcendentals = 2 * N_pad * L * hidden + N_pad * latent + N_pad * out_pad + 2 * hidden
    bytes_accessed = (sum(int(np.prod(a.shape)) for a in args)
                      + N_pad * out_pad + N_pad * 2 * latent) * 4

    # Everything is tiny (<< 1 MiB total), so a single grid-less invocation with whole
    # arrays resident in VMEM is optimal: one kernel dispatch, zero HBM round-trips.
    # TODO(synk): at large batch, add a row-tiled grid with dimension_semantics=
    # ("parallel",) (v7x has 2 TensorCores), constant index_maps for the weights, an
    # explicit vmem_limit_bytes, and a two-pass / cross-tile BN reduction.
    recon_pad, mulv = pl.pallas_call(
        kernel,
        out_shape=(
            jax.ShapeDtypeStruct((N_pad, out_pad), jnp.float32),
            jax.ShapeDtypeStruct((N_pad, 2 * latent), jnp.float32),
        ),
        in_specs=[pl.BlockSpec(memory_space=pltpu.MemorySpace.VMEM)] * len(args),
        out_specs=(pl.BlockSpec(memory_space=pltpu.MemorySpace.VMEM),) * 2,
        cost_estimate=pl.CostEstimate(flops=int(flops),
                                      transcendentals=int(transcendentals),
                                      bytes_accessed=int(bytes_accessed)),
    )(*args)

    mu = mulv[:N, :latent]
    logvar = mulv[:N, latent:]
    recon = recon_pad[:N, :out_cols].reshape(N, C_in, dec, dec)  # cols already NCHW-flat
    return [recon, x_ncl, mu, logvar]


# ---------------------------------- main -------------------------------------- #

if __name__ == "__main__":
    key = jax.random.PRNGKey(0)
    N, C_IN, IN_SIZE, LATENT = 2, 4, 16, 8         # input is NCL for the Conv1d encoder

    params, meta = init_params(key, C_IN, IN_SIZE, LATENT)
    x = jax.random.normal(jax.random.fold_in(key, 100), (N, C_IN, IN_SIZE), jnp.float32)
    eps = jax.random.normal(jax.random.fold_in(key, 200), (N, LATENT), jnp.float32)

    recon, inp, mu, logvar = pae_forward(params, meta, x, eps)
    jax.block_until_ready((recon, inp, mu, logvar))

    assert recon.shape == (N, C_IN, 4, 4)
    assert inp.shape == (N, C_IN, IN_SIZE)
    assert mu.shape == (N, LATENT) and logvar.shape == (N, LATENT)
    assert bool(jnp.all(jnp.isfinite(recon))) and bool(jnp.all(jnp.isfinite(mu)))
    assert bool(jnp.all(jnp.isfinite(logvar)))
    print("KERNEL_OK")
</pallas_src>

<mosaic_0001>
module attributes {stable_mosaic.version = 11 : i64} {
  func.func @kernel(%arg0: memref<8x64xf32, #tpu.memory_space<vmem>>, %arg1: memref<8x8xf32, #tpu.memory_space<vmem>>, %arg2: memref<64x128xf32, #tpu.memory_space<vmem>>, %arg3: memref<128x8xf32, #tpu.memory_space<vmem>>, %arg4: memref<8x128xf32, #tpu.memory_space<vmem>>, %arg5: memref<128x16xf32, #tpu.memory_space<vmem>>, %arg6: memref<8x128xf32, #tpu.memory_space<vmem>>, %arg7: memref<128x128xf32, #tpu.memory_space<vmem>>, %arg8: memref<128x128xf32, #tpu.memory_space<vmem>>, %arg9: memref<8x128xf32, #tpu.memory_space<vmem>>, %arg10: memref<8x16xf32, #tpu.memory_space<vmem>>) attributes {dimension_semantics = [], scalar_prefetch = 0 : i64, scratch_operands = 0 : i64, tpu.core_type = #tpu.core_type<tc>} {
    %c0 = arith.constant 0 : index
    %c0_0 = arith.constant 0 : index
    %0 = vector.load %arg4[%c0, %c0_0] : memref<8x128xf32, #tpu.memory_space<vmem>>, vector<8x128xf32>
    %1 = vector.extract_strided_slice %0 {offsets = [0, 0], sizes = [1, 8], strides = [1, 1]} : vector<8x128xf32> to vector<1x8xf32>
    %2 = vector.extract_strided_slice %0 {offsets = [1, 0], sizes = [1, 8], strides = [1, 1]} : vector<8x128xf32> to vector<1x8xf32>
    %3 = vector.extract_strided_slice %0 {offsets = [2, 0], sizes = [1, 8], strides = [1, 1]} : vector<8x128xf32> to vector<1x8xf32>
    %4 = vector.extract_strided_slice %0 {offsets = [3, 0], sizes = [1, 8], strides = [1, 1]} : vector<8x128xf32> to vector<1x8xf32>
    %5 = vector.extract_strided_slice %0 {offsets = [4, 0], sizes = [1, 16], strides = [1, 1]} : vector<8x128xf32> to vector<1x16xf32>
    %6 = vector.extract_strided_slice %0 {offsets = [5, 0], sizes = [1, 128], strides = [1, 1]} : vector<8x128xf32> to vector<1x128xf32>
    %7 = vector.extract_strided_slice %0 {offsets = [6, 0], sizes = [1, 128], strides = [1, 1]} : vector<8x128xf32> to vector<1x128xf32>
    %c0_1 = arith.constant 0 : index
    %c0_2 = arith.constant 0 : index
    %8 = vector.load %arg0[%c0_1, %c0_2] : memref<8x64xf32, #tpu.memory_space<vmem>>, vector<8x64xf32>
    %c0_3 = arith.constant 0 : index
    %c0_4 = arith.constant 0 : index
    %9 = vector.load %arg2[%c0_3, %c0_4] : memref<64x128xf32, #tpu.memory_space<vmem>>, vector<64x128xf32>
    %cst = arith.constant dense<0.000000e+00> : vector<8x128xf32>
    %10 = tpu.matmul %8, %9, %cst {dimension_numbers = #tpu.dot_dimension_numbers<[1], [0], [0], [1], [0, 0, 1, 1], [], []>} : vector<8x64xf32>, vector<64x128xf32>, vector<8x128xf32> -> vector<8x128xf32>
    %11 = tpu.iota {dimensions = array<i32: 0>} : vector<8x128xi32>
    %c2_i32 = arith.constant 2 : i32
    %12 = vector.broadcast %c2_i32 : i32 to vector<8x128xi32>
    %13 = arith.cmpi slt, %11, %12 : vector<8x128xi32>
    %cst_5 = arith.constant 0.000000e+00 : f32
    %14 = vector.broadcast %cst_5 : f32 to vector<8x128xf32>
    %15 = arith.select %13, %10, %14 : vector<8x128xi1>, vector<8x128xf32>
    %cst_6 = arith.constant dense<0.000000e+00> : vector<128xf32>
    %16 = vector.multi_reduction <add>, %15, %cst_6 [0] : vector<8x128xf32> to vector<128xf32>
    %17 = vector.shape_cast %16 : vector<128xf32> to vector<1x128xf32>
    %c0_7 = arith.constant 0 : index
    %c0_8 = arith.constant 0 : index
    %18 = vector.load %arg3[%c0_7, %c0_8] : memref<128x8xf32, #tpu.memory_space<vmem>>, vector<128x8xf32>
    %cst_9 = arith.constant dense<0.000000e+00> : vector<1x8xf32>
    %19 = tpu.matmul %17, %18, %cst_9 {dimension_numbers = #tpu.dot_dimension_numbers<[1], [0], [0], [1], [0, 0, 1, 1], [], []>} : vector<1x128xf32>, vector<128x8xf32>, vector<1x8xf32> -> vector<1x8xf32>
    %20 = arith.mulf %15, %15 : vector<8x128xf32>
    %cst_10 = arith.constant dense<0.000000e+00> : vector<128xf32>
    %21 = vector.multi_reduction <add>, %20, %cst_10 [0] : vector<8x128xf32> to vector<128xf32>
    %22 = vector.shape_cast %21 : vector<128xf32> to vector<1x128xf32>
    %c0_11 = arith.constant 0 : index
    %c0_12 = arith.constant 0 : index
    %23 = vector.load %arg3[%c0_11, %c0_12] : memref<128x8xf32, #tpu.memory_space<vmem>>, vector<128x8xf32>
    %cst_13 = arith.constant dense<0.000000e+00> : vector<1x8xf32>
    %24 = tpu.matmul %22, %23, %cst_13 {dimension_numbers = #tpu.dot_dimension_numbers<[1], [0], [0], [1], [0, 0, 1, 1], [], []>} : vector<1x128xf32>, vector<128x8xf32>, vector<1x8xf32> -> vector<1x8xf32>
    %cst_14 = arith.constant 3.125000e-02 : f32
    %25 = vector.broadcast %cst_14 : f32 to vector<1x8xf32>
    %26 = arith.mulf %19, %25 : vector<1x8xf32>
    %cst_15 = arith.constant 3.125000e-02 : f32
    %27 = vector.broadcast %cst_15 : f32 to vector<1x8xf32>
    %28 = arith.mulf %24, %27 : vector<1x8xf32>
    %29 = arith.mulf %26, %26 : vector<1x8xf32>
    %30 = arith.subf %28, %29 : vector<1x8xf32>
    %cst_16 = arith.constant 9.99999974E-6 : f32
    %31 = vector.broadcast %cst_16 : f32 to vector<1x8xf32>
    %32 = arith.addf %30, %31 : vector<1x8xf32>
    %33 = math.rsqrt %32 : vector<1x8xf32>
    %34 = arith.mulf %33, %1 : vector<1x8xf32>
    %35 = arith.mulf %26, %34 : vector<1x8xf32>
    %36 = arith.subf %2, %35 : vector<1x8xf32>
    %37 = tpu.concatenate %34, %34, %34, %34, %34, %34, %34, %34, %34, %34, %34, %34, %34, %34, %34, %34 in 1 : vector<1x8xf32>, vector<1x8xf32>, vector<1x8xf32>, vector<1x8xf32>, vector<1x8xf32>, vector<1x8xf32>, vector<1x8xf32>, vector<1x8xf32>, vector<1x8xf32>, vector<1x8xf32>, vector<1x8xf32>, vector<1x8xf32>, vector<1x8xf32>, vector<1x8xf32>, vector<1x8xf32>, vector<1x8xf32> -> vector<1x128xf32>
    %38 = vector.broadcast %37 : vector<1x128xf32> to vector<8x128xf32>
    %39 = arith.mulf %10, %38 : vector<8x128xf32>
    %40 = tpu.concatenate %36, %36, %36, %36, %36, %36, %36, %36, %36, %36, %36, %36, %36, %36, %36, %36 in 1 : vector<1x8xf32>, vector<1x8xf32>, vector<1x8xf32>, vector<1x8xf32>, vector<1x8xf32>, vector<1x8xf32>, vector<1x8xf32>, vector<1x8xf32>, vector<1x8xf32>, vector<1x8xf32>, vector<1x8xf32>, vector<1x8xf32>, vector<1x8xf32>, vector<1x8xf32>, vector<1x8xf32>, vector<1x8xf32> -> vector<1x128xf32>
    %41 = vector.broadcast %40 : vector<1x128xf32> to vector<8x128xf32>
    %42 = arith.addf %39, %41 : vector<8x128xf32>
    %cst_17 = arith.constant 5.000000e-01 : f32
    %43 = vector.broadcast %cst_17 : f32 to vector<8x128xf32>
    %44 = arith.mulf %43, %42 : vector<8x128xf32>
    %cst_18 = arith.constant 0.707106769 : f32
    %45 = vector.broadcast %cst_18 : f32 to vector<8x128xf32>
    %46 = arith.mulf %42, %45 : vector<8x128xf32>
    %47 = math.erf %46 : vector<8x128xf32>
    %cst_19 = arith.constant 1.000000e+00 : f32
    %48 = vector.broadcast %cst_19 : f32 to vector<8x128xf32>
    %49 = arith.addf %48, %47 : vector<8x128xf32>
    %50 = arith.mulf %44, %49 : vector<8x128xf32>
    %c0_20 = arith.constant 0 : index
    %c0_21 = arith.constant 0 : index
    %51 = vector.load %arg5[%c0_20, %c0_21] : memref<128x16xf32, #tpu.memory_space<vmem>>, vector<128x16xf32>
    %cst_22 = arith.constant dense<0.000000e+00> : vector<8x16xf32>
    %52 = tpu.matmul %50, %51, %cst_22 {dimension_numbers = #tpu.dot_dimension_numbers<[1], [0], [0], [1], [0, 0, 1, 1], [], []>} : vector<8x128xf32>, vector<128x16xf32>, vector<8x16xf32> -> vector<8x16xf32>
    %53 = vector.broadcast %5 : vector<1x16xf32> to vector<8x16xf32>
    %54 = arith.addf %52, %53 : vector<8x16xf32>
    %c0_23 = arith.constant 0 : index
    %c0_24 = arith.constant 0 : index
    %55 = vector.load %arg10[%c0_23, %c0_24] : memref<8x16xf32, #tpu.memory_space<vmem>>, vector<8x16xf32>
    tpu.vector_store %arg10[%c0_23, %c0_24], %54 {strides = array<i32>} : memref<8x16xf32, #tpu.memory_space<vmem>>, vector<8x16xf32>,
    %56 = vector.extract_strided_slice %54 {offsets = [0, 0], sizes = [8, 8], strides = [1, 1]} : vector<8x16xf32> to vector<8x8xf32>
    %57 = vector.extract_strided_slice %54 {offsets = [0, 8], sizes = [8, 8], strides = [1, 1]} : vector<8x16xf32> to vector<8x8xf32>
    %cst_25 = arith.constant 5.000000e-01 : f32
    %58 = vector.broadcast %cst_25 : f32 to vector<8x8xf32>
    %59 = arith.mulf %58, %57 : vector<8x8xf32>
    %60 = math.exp %59 : vector<8x8xf32>
    %c0_26 = arith.constant 0 : index
    %c0_27 = arith.constant 0 : index
    %61 = vector.load %arg1[%c0_26, %c0_27] : memref<8x8xf32, #tpu.memory_space<vmem>>, vector<8x8xf32>
    %62 = arith.mulf %60, %61 : vector<8x8xf32>
    %63 = arith.addf %56, %62 : vector<8x8xf32>
    %c0_28 = arith.constant 0 : index
    %c0_29 = arith.constant 0 : index
    %64 = vector.load %arg6[%c0_28, %c0_29] : memref<8x128xf32, #tpu.memory_space<vmem>>, vector<8x128xf32>
    %cst_30 = arith.constant dense<0.000000e+00> : vector<8x128xf32>
    %65 = tpu.matmul %63, %64, %cst_30 {dimension_numbers = #tpu.dot_dimension_numbers<[1], [0], [0], [1], [0, 0, 1, 1], [], []>} : vector<8x8xf32>, vector<8x128xf32>, vector<8x128xf32> -> vector<8x128xf32>
    %66 = vector.broadcast %6 : vector<1x128xf32> to vector<8x128xf32>
    %67 = arith.addf %65, %66 : vector<8x128xf32>
    %c0_31 = arith.constant 0 : index
    %c0_32 = arith.constant 0 : index
    %68 = vector.load %arg7[%c0_31, %c0_32] : memref<128x128xf32, #tpu.memory_space<vmem>>, vector<128x128xf32>
    %cst_33 = arith.constant dense<0.000000e+00> : vector<8x128xf32>
    %69 = tpu.matmul %67, %68, %cst_33 {dimension_numbers = #tpu.dot_dimension_numbers<[1], [0], [0], [1], [0, 0, 1, 1], [], []>} : vector<8x128xf32>, vector<128x128xf32>, vector<8x128xf32> -> vector<8x128xf32>
    %70 = tpu.iota {dimensions = array<i32: 0>} : vector<8x128xi32>
    %c2_i32_34 = arith.constant 2 : i32
    %71 = vector.broadcast %c2_i32_34 : i32 to vector<8x128xi32>
    %72 = arith.cmpi slt, %70, %71 : vector<8x128xi32>
    %cst_35 = arith.constant 0.000000e+00 : f32
    %73 = vector.broadcast %cst_35 : f32 to vector<8x128xf32>
    %74 = arith.select %72, %69, %73 : vector<8x128xi1>, vector<8x128xf32>
    %cst_36 = arith.constant dense<0.000000e+00> : vector<128xf32>
    %75 = vector.multi_reduction <add>, %74, %cst_36 [0] : vector<8x128xf32> to vector<128xf32>
    %76 = vector.shape_cast %75 : vector<128xf32> to vector<1x128xf32>
    %c0_37 = arith.constant 0 : index
    %c0_38 = arith.constant 0 : index
    %77 = vector.load %arg3[%c0_37, %c0_38] : memref<128x8xf32, #tpu.memory_space<vmem>>, vector<128x8xf32>
    %cst_39 = arith.constant dense<0.000000e+00> : vector<1x8xf32>
    %78 = tpu.matmul %76, %77, %cst_39 {dimension_numbers = #tpu.dot_dimension_numbers<[1], [0], [0], [1], [0, 0, 1, 1], [], []>} : vector<1x128xf32>, vector<128x8xf32>, vector<1x8xf32> -> vector<1x8xf32>
    %79 = arith.mulf %74, %74 : vector<8x128xf32>
    %cst_40 = arith.constant dense<0.000000e+00> : vector<128xf32>
    %80 = vector.multi_reduction <add>, %79, %cst_40 [0] : vector<8x128xf32> to vector<128xf32>
    %81 = vector.shape_cast %80 : vector<128xf32> to vector<1x128xf32>
    %c0_41 = arith.constant 0 : index
    %c0_42 = arith.constant 0 : index
    %82 = vector.load %arg3[%c0_41, %c0_42] : memref<128x8xf32, #tpu.memory_space<vmem>>, vector<128x8xf32>
    %cst_43 = arith.constant dense<0.000000e+00> : vector<1x8xf32>
    %83 = tpu.matmul %81, %82, %cst_43 {dimension_numbers = #tpu.dot_dimension_numbers<[1], [0], [0], [1], [0, 0, 1, 1], [], []>} : vector<1x128xf32>, vector<128x8xf32>, vector<1x8xf32> -> vector<1x8xf32>
    %cst_44 = arith.constant 3.125000e-02 : f32
    %84 = vector.broadcast %cst_44 : f32 to vector<1x8xf32>
    %85 = arith.mulf %78, %84 : vector<1x8xf32>
    %cst_45 = arith.constant 3.125000e-02 : f32
    %86 = vector.broadcast %cst_45 : f32 to vector<1x8xf32>
    %87 = arith.mulf %83, %86 : vector<1x8xf32>
    %88 = arith.mulf %85, %85 : vector<1x8xf32>
    %89 = arith.subf %87, %88 : vector<1x8xf32>
    %cst_46 = arith.constant 9.99999974E-6 : f32
    %90 = vector.broadcast %cst_46 : f32 to vector<1x8xf32>
    %91 = arith.addf %89, %90 : vector<1x8xf32>
    %92 = math.rsqrt %91 : vector<1x8xf32>
    %93 = arith.mulf %92, %3 : vector<1x8xf32>
    %94 = arith.mulf %85, %93 : vector<1x8xf32>
    %95 = arith.subf %4, %94 : vector<1x8xf32>
    %96 = tpu.concatenate %93, %93, %93, %93, %93, %93, %93, %93, %93, %93, %93, %93, %93, %93, %93, %93 in 1 : vector<1x8xf32>, vector<1x8xf32>, vector<1x8xf32>, vector<1x8xf32>, vector<1x8xf32>, vector<1x8xf32>, vector<1x8xf32>, vector<1x8xf32>, vector<1x8xf32>, vector<1x8xf32>, vector<1x8xf32>, vector<1x8xf32>, vector<1x8xf32>, vector<1x8xf32>, vector<1x8xf32>, vector<1x8xf32> -> vector<1x128xf32>
    %97 = vector.broadcast %96 : vector<1x128xf32> to vector<8x128xf32>
    %98 = arith.mulf %69, %97 : vector<8x128xf32>
    %99 = tpu.concatenate %95, %95, %95, %95, %95, %95, %95, %95, %95, %95, %95, %95, %95, %95, %95, %95 in 1 : vector<1x8xf32>, vector<1x8xf32>, vector<1x8xf32>, vector<1x8xf32>, vector<1x8xf32>, vector<1x8xf32>, vector<1x8xf32>, vector<1x8xf32>, vector<1x8xf32>, vector<1x8xf32>, vector<1x8xf32>, vector<1x8xf32>, vector<1x8xf32>, vector<1x8xf32>, vector<1x8xf32>, vector<1x8xf32> -> vector<1x128xf32>
    %100 = vector.broadcast %99 : vector<1x128xf32> to vector<8x128xf32>
    %101 = arith.addf %98, %100 : vector<8x128xf32>
    %cst_47 = arith.constant 5.000000e-01 : f32
    %102 = vector.broadcast %cst_47 : f32 to vector<8x128xf32>
    %103 = arith.mulf %102, %101 : vector<8x128xf32>
    %cst_48 = arith.constant 0.707106769 : f32
    %104 = vector.broadcast %cst_48 : f32 to vector<8x128xf32>
    %105 = arith.mulf %101, %104 : vector<8x128xf32>
    %106 = math.erf %105 : vector<8x128xf32>
    %cst_49 = arith.constant 1.000000e+00 : f32
    %107 = vector.broadcast %cst_49 : f32 to vector<8x128xf32>
    %108 = arith.addf %107, %106 : vector<8x128xf32>
    %109 = arith.mulf %103, %108 : vector<8x128xf32>
    %c0_50 = arith.constant 0 : index
    %c0_51 = arith.constant 0 : index
    %110 = vector.load %arg8[%c0_50, %c0_51] : memref<128x128xf32, #tpu.memory_space<vmem>>, vector<128x128xf32>
    %cst_52 = arith.constant dense<0.000000e+00> : vector<8x128xf32>
    %111 = tpu.matmul %109, %110, %cst_52 {dimension_numbers = #tpu.dot_dimension_numbers<[1], [0], [0], [1], [0, 0, 1, 1], [], []>} : vector<8x128xf32>, vector<128x128xf32>, vector<8x128xf32> -> vector<8x128xf32>
    %112 = vector.broadcast %7 : vector<1x128xf32> to vector<8x128xf32>
    %113 = arith.addf %111, %112 : vector<8x128xf32>
    %114 = math.tanh %113 : vector<8x128xf32>
    %c0_53 = arith.constant 0 : index
    %c0_54 = arith.constant 0 : index
    %115 = vector.load %arg9[%c0_53, %c0_54] : memref<8x128xf32, #tpu.memory_space<vmem>>, vector<8x128xf32>
    tpu.vector_store %arg9[%c0_53, %c0_54], %114 {strides = array<i32>} : memref<8x128xf32, #tpu.memory_space<vmem>>, vector<8x128xf32>,
    return
  }
}

</mosaic_0001>

<bundles_post_ra>
// kernel: tpu_custom_call.1
= control target key start
LH: loop header
LB: loop body
LE: loop exit
PB: predicated region body
PF: predicated region fallthrough
CT: control target
= control target key end

     0   :  { %16 = vsyncpa [#allocation3], 0  ;;  %s2602_s0 = inlined_call_operand.vmem [shape: f32[8,64], index: 0, kind: input, shape index: {}]   ;;  %s2603_s1 = inlined_call_operand.hbm [shape: f32[8,8], index: 1, kind: input, shape index: {}]   ;;  %s2604_s2 = inlined_call_operand.hbm [shape: f32[64,128], index: 2, kind: input, shape index: {}]   ;;  %s2605_s3 = inlined_call_operand.vmem [shape: f32[128,8], index: 3, kind: input, shape index: {}]   ;;  %s2606_s4 = inlined_call_operand.vmem [shape: f32[8,128], index: 4, kind: input, shape index: {}]   ;;  %s2607_s5 = inlined_call_operand.vmem [shape: f32[128,16], index: 5, kind: input, shape index: {}]   ;;  %s2608_s6 = inlined_call_operand.vmem [shape: f32[8,128], index: 6, kind: input, shape index: {}]   ;;  %s2609_s7 = inlined_call_operand.vmem [shape: f32[128,128], index: 7, kind: input, shape index: {}]   ;;  %s2610_s8 = inlined_call_operand.vmem [shape: f32[128,128], index: 8, kind: input, shape index: {}]   ;;  %s2611_s9 = inlined_call_operand.hbm [shape: f32[8,128], index: 9, kind: output, shape index: {0}]   ;;  %s2612_s10 = inlined_call_operand.hbm [shape: f32[8,16], index: 10, kind: output, shape index: {1}]  }
   0x1   :  { %17 = vsyncpa [#allocation6], 0 }
   0x2   :  { %18 = vsyncpa [#allocation4], 0 }
   0x3   :  { %19 = vsyncpa [#allocation9], 0  ;;  %s1907_s13 = smov [#allocation2]   ;;  %s1908_s15 = smov [#allocation5]  }
   0x4   :  { %s28_s14 = sshll.u32 %s1907_s13, 4  ;;  %s37_s16 = sshll.u32 %s1908_s15, 4  ;;  %s29_s14 = int_to_ptr.vmem [resolvable:$true] %s28_s14  ;;  %s1985_s16 = int_to_ptr.vmem [resolvable:$true] %s37_s16 }
   0x5   :  { %s1811_s19 = scalar_lea.hbm %s2603_s1, 128 }
   0x6   :  { %p1812_p0 = scmp.ne.s32.totalorder %s2603_s1, %s1811_s19  ;;  %p1815_p1 = scmp.lt.u32.totalorder %s1811_s19, %s2603_s1 }
   0x8   :  { %p1817_p2 = pnand %p1815_p1, %p1812_p0 }
   0xa   :  { %1820 = shalt.err (!%p1817_p2)
}
   0xb   :  { %s1821_s24 = scalar_lea.vmem %s29_s14, 128  ;;  %p1826_p4 = scmp.lt.s32.totalorder %s29_s14, %s29_s14 }
   0xc   :  { %p1822_p3 = scmp.ne.s32.totalorder %s29_s14, %s1821_s24  ;;  %p1827_p5 = scmp.lt.s32.totalorder %s1821_s24, %s1821_s24 }
   0xe   :  { %p1828_p6 = por %p1827_p5, %p1826_p4 }
  0x10   :  { %p1829_p7 = pnand %p1828_p6, %p1822_p3 }
  0x12   :  { %1832 = shalt.err (!%p1829_p7)
}
  0x13   :  { %31 = dma.hbm_to_vmem [thread:$0]  %s2603_s1, 128, %s29_s14, [#allocation3]  }
  0x14   :  { %s1833_s29 = scalar_lea.hbm %s2604_s2, 1024 }
  0x15   :  { %p1834_p8 = scmp.ne.s32.totalorder %s2604_s2, %s1833_s29  ;;  %p1837_p9 = scmp.lt.u32.totalorder %s1833_s29, %s2604_s2 }
  0x17   :  { %p1839_p10 = pnand %p1837_p9, %p1834_p8 }
  0x19   :  { %1842 = shalt.err (!%p1839_p10)
}
  0x1a   :  { %s1843_s15 = scalar_lea.vmem %s1985_s16, 1024  ;;  %p1848_p12 = scmp.lt.s32.totalorder %s1985_s16, %s1985_s16 }
  0x1b   :  { %p1844_p11 = scmp.ne.s32.totalorder %s1985_s16, %s1843_s15  ;;  %p1849_p13 = scmp.lt.s32.totalorder %s1843_s15, %s1843_s15 }
  0x1d   :  { %p1850_p0 = por %p1849_p13, %p1848_p12 }
  0x1f   :  { %p1851_p1 = pnand %p1850_p0, %p1844_p11 }
  0x21   :  { %1854 = shalt.err (!%p1851_p1)
}
  0x22   :  { %s1909_s1 = smov 128   ;;  %s1910_s14 = smov 8  }
  0x23   :  { %43 = dma.hbm_to_vmem [thread:$0]  %s2604_s2, 1024, %s1985_s16, [#allocation6], %s1909_s1, %s1909_s1, %s1910_s14  }
  0x24   :  { %1899 = dma.done.wait [#allocation3], 128  }
  0x25   :  { %1900 = vsyncadd [#allocation3], 4294967168 }
  0x26   :  { %1901 = dma.done.wait [#allocation6], 1024  }
  0x27   :  { %1902 = vsyncadd [#allocation6], 4294966272  ;;  %v1911_v0 = vmov 0.0|0.0   ;;  %vm1912_vm0 = vmmov 0   ;;  %v1913_v1 = vmov 0.0   ;;  %v64_v2 = vld [vmem:[#allocation5] sm:$0xff]  ;;  %v146_v39 = vlaneseq }
  0x28   :  { %1596 = vmatprep.subr.bf16.mxu0 %v1911_v0  ;;  %1343 = vmatprep.mubr.msk.f32.mxu0 %vm1912_vm0, %v1913_v1  ;;  %v65_v3 = vld [vmem:[#allocation5 + $0x8] sm:$0xff]  ;;  %v66_v4 = vld [vmem:[#allocation5 + $0x10] sm:$0xff]  ;;  %v67_v6 = vld [vmem:[#allocation5 + $0x18] sm:$0xff]  ;;  %vm72_vm1 = vcmask 523264   ;;  %s1914_s30 = smov 24   ;;  %s1915_s11 = smov 16  }
  0x29   :  { %1608 = vmatprep.subr.bf16.mxu1 %v1911_v0  ;;  %1378 = vmatprep.mubr.msk.f32.mxu1 %vm1912_vm0, %v1913_v1  ;;  %v1597_v5 = vpack.c.bf16 %v65_v3, %v64_v2  ;;  %v1600_v7 = vpack.c.bf16 %v67_v6, %v66_v4  ;;  %v156_v8 = vld [vmem:[%s2605_s3] sm:$0xff]  ;;  %v157_v9 = vld [vmem:[%s2605_s3 + $0x8] sm:$0xff]  ;;  %v158_v10 = vld [vmem:[%s2605_s3 + $0x10] sm:$0xff]  ;;  %v2129_v40 = vshrl.u32 %v146_v39, 7  ;;  %s1917_s12 = smov 40   ;;  %s1918_s13 = smov 48  }
  0x2a   :  { %v68_v11 = vld [vmem:[#allocation5 + $0x20] sm:$0xff]  ;;  %v69_v12 = vld [vmem:[#allocation5 + $0x28] sm:$0xff]  ;;  %v2033_v13 = vpack.c.bf16 %v157_v9, %v156_v8  ;;  %v159_v14 = vld [vmem:[%s2605_s3 + $0x18] sm:$0xff]  ;;  %s1919_s15 = smov 56   ;;  %s1920_s1 = smov 64   ;;  %vm377_vm3 = vcmask 64512  }
  0x2b   :  { %1598 = vmatpush3.bf16.msra.mxu0 %v1597_v5  ;;  %v2039_v15 = vpack.c.bf16 %v159_v14, %v158_v10  ;;  %v1603_v16 = vpack.c.bf16 %v69_v12, %v68_v11  ;;  %v160_v17 = vld [vmem:[%s2605_s3 + $0x20] sm:$0xff]  ;;  %v161_v18 = vld [vmem:[%s2605_s3 + $0x28] sm:$0xff]  ;;  %v70_v19 = vld [vmem:[#allocation5 + $0x30] sm:$0xff]  ;;  %vm148_vm2 = vcmp.lt.s32.totalorder %v2129_v40, 2  ;;  %s1921_s17 = smov 72   ;;  %s1922_s18 = smov 80  }
  0x2c   :  { %1599 = vmatprep.subr.bf16.mxu0 %v1911_v0  ;;  %1610 = vmatpush3.bf16.msra.mxu1 %v2033_v13  ;;  %v71_v20 = vld [vmem:[#allocation5 + $0x38] sm:$0xff]  ;;  %v2050_v21 = vpack.c.bf16 %v161_v18, %v160_v17  ;;  %v162_v23 = vld [vmem:[%s2605_s3 + $0x30] sm:$0xff]  ;;  %v163_v24 = vld [vmem:[%s2605_s3 + $0x38] sm:$0xff]  ;;  %s1923_s20 = smov 88   ;;  %s1924_s25 = smov 96   ;;  %vm379_vm4 = vcmask 130048  }
  0x2d   :  { %1611 = vmatprep.subr.bf16.mxu1 %v1911_v0  ;;  %v1606_v22 = vpack.c.bf16 %v71_v20, %v70_v19  ;;  %v2061_v25 = vpack.c.bf16 %v163_v24, %v162_v23  ;;  %v63_v26 = vld [vmem:[%s2602_s0] sm:$0xff]  ;;  %v165_v28 = vld [vmem:[%s2605_s3 + $0x48] sm:$0xff]  ;;  %v166_v30 = vld [vmem:[%s2605_s3 + $0x50] sm:$0xff]  ;;  %s1925_s29 = smov 104   ;;  %s1926_s21 = smov 112   ;;  %vm381_vm5 = vcmask 195584  }
  0x2e   :  { %v164_v27 = vld [vmem:[%s2605_s3 + $0x40] sm:$0xff]  ;;  %v167_v31 = vld [vmem:[%s2605_s3 + $0x58] sm:$0xff]  ;;  %v169_v34 = vld [vmem:[%s2605_s3 + $0x68] sm:$0xff]  ;;  %s1927_s27 = smov 120   ;;  %vm383_vm6 = vcmask 261120   ;;  %vm2613_vm7 = vcmask 326656  }
  0x2f   :  { %1601 = vmatpush3.bf16.msra.mxu0 %v1600_v7  ;;  %v2076_v29 = vpack.c.bf16 %v165_v28, %v164_v27  ;;  %v2099_v32 = vpack.c.bf16 %v167_v31, %v166_v30  ;;  %v168_v33 = vld [vmem:[%s2605_s3 + $0x60] sm:$0xff]  ;;  %v170_v36 = vld [vmem:[%s2605_s3 + $0x70] sm:$0xff]  ;;  %v171_v37 = vld [vmem:[%s2605_s3 + $0x78] sm:$0xff]  ;;  %vm387_vm8 = vcmask 392192   ;;  %vm389_vm9 = vcmask 457728  }
  0x30   :  { %1602 = vmatprep.subr.bf16.mxu0 %v1911_v0  ;;  %1613 = vmatpush3.bf16.msra.mxu1 %v2039_v15  ;;  %v2111_v35 = vpack.c.bf16 %v169_v34, %v168_v33  ;;  %v2123_v38 = vpack.c.bf16 %v171_v37, %v170_v36  ;;  %v2144_v4 = vld [vmem:[%s2606_s4] sm:$0xff]  ;;  %s1916_s4 = smov 32   ;;  %v483_v11 = vld [vmem:[%s2607_s5 + $0x8] sm:$0xff]  ;;  %v484_v14 = vld [vmem:[%s2607_s5 + $0x10] sm:$0xff]  ;;  %vm392_vm10 = vcmask 588800   ;;  %vm394_vm11 = vcmask 654336  }
  0x31   :  { %1614 = vmatprep.subr.bf16.mxu1 %v1911_v0  ;;  %v482_v10 = vld [vmem:[%s2607_s5] sm:$0xff]  ;;  %v487_v19 = vld [vmem:[%s2607_s5 + $0x28] sm:$0xff]  ;;  %v489_v23 = vld [vmem:[%s2607_s5 + $0x38] sm:$0xff]  ;;  %vm396_vm12 = vcmask 719872   ;;  %vm398_vm13 = vcmask 785408   ;;  %vm400_vm14 = vcmask 850944  }
  0x32   :  { %v1657_v12 = vpack.c.bf16 %v483_v11, %v482_v10  ;;  %v486_v18 = vld [vmem:[%s2607_s5 + $0x20] sm:$0xff]  ;;  %v491_v27 = vld [vmem:[%s2607_s5 + $0x48] sm:$0xff]  ;;  %v492_v30 = vld [vmem:[%s2607_s5 + $0x50] sm:$0xff]  ;;  %vm402_vm15 = vcmask 916480  }
  0x33   :  { %1604 = vmatpush3.bf16.msra.mxu0 %v1603_v16  ;;  %v485_v16 = vld [vmem:[%s2607_s5 + $0x18] sm:$0xff]  ;;  %v1663_v20 = vpack.c.bf16 %v487_v19, %v486_v18  ;;  %v494_v34 = vld [vmem:[%s2607_s5 + $0x60] sm:$0xff]  ;;  %v495_v36 = vld [vmem:[%s2607_s5 + $0x68] sm:$0xff] }
  0x34   :  { %1605 = vmatprep.subr.bf16.mxu0 %v1911_v0  ;;  %1616 = vmatpush3.bf16.msra.mxu1 %v2050_v21  ;;  %v1660_v17 = vpack.c.bf16 %v485_v16, %v484_v14  ;;  %v493_v31 = vld [vmem:[%s2607_s5 + $0x58] sm:$0xff]  ;;  %v1675_v37 = vpack.c.bf16 %v495_v36, %v494_v34  ;;  %v496_v39 = vld [vmem:[%s2607_s5 + $0x70] sm:$0xff] }
  0x35   :  { %1617 = vmatprep.subr.bf16.mxu1 %v1911_v0  ;;  %v1672_v33 = vpack.c.bf16 %v493_v31, %v492_v30 }
  0x37   :  { %1607 = vmatpush3.bf16.msra.mxu0 %v1606_v22  ;;  %v488_v22 = vld [vmem:[%s2607_s5 + $0x30] sm:$0xff] }
  0x38   :  { %1632 = vmatprep.subr.bf16.mxu0 %v1911_v0  ;;  %1619 = vmatpush3.bf16.msra.mxu1 %v2061_v25  ;;  %v1666_v24 = vpack.c.bf16 %v489_v23, %v488_v22 }
  0x39   :  { %1620 = vmatprep.subr.bf16.mxu1 %v1911_v0 }
  0x3a   :  { %1344 = vmatmul.mubr.msk.f32.vlgmr.msra.gmra.mrb[0].mxu0 %vm72_vm1, %v63_v26  ;;  %v490_v26 = vld [vmem:[%s2607_s5 + $0x40] sm:$0xff] }
  0x3b   :  { %1634 = vmatpush3.bf16.msra.mxu0 %v2033_v13  ;;  %1413 = vmatprep.mubr.msk.f32.mxu0 %vm1912_vm0, %v1913_v1  ;;  %v1669_v28 = vpack.c.bf16 %v491_v27, %v490_v26 }
  0x3c   :  { %1635 = vmatprep.subr.bf16.mxu0 %v1911_v0  ;;  %1622 = vmatpush3.bf16.msra.mxu1 %v2076_v29 }
  0x3d   :  { %1623 = vmatprep.subr.bf16.mxu1 %v1911_v0 }
  0x3f   :  { %1637 = vmatpush3.bf16.msra.mxu0 %v2039_v15 }
  0x40   :  { %1638 = vmatprep.subr.bf16.mxu0 %v1911_v0  ;;  %1625 = vmatpush3.bf16.msra.mxu1 %v2099_v32 }
  0x41   :  { %1626 = vmatprep.subr.bf16.mxu1 %v1911_v0 }
  0x43   :  { %1640 = vmatpush3.bf16.msra.mxu0 %v2050_v21 }
  0x44   :  { %1641 = vmatprep.subr.bf16.mxu0 %v1911_v0  ;;  %1628 = vmatpush3.bf16.msra.mxu1 %v2111_v35 }
  0x45   :  { %1629 = vmatprep.subr.bf16.mxu1 %v1911_v0 }
  0x47   :  { %1643 = vmatpush3.bf16.msra.mxu0 %v2061_v25 }
  0x48   :  { %1644 = vmatprep.subr.bf16.mxu0 %v1911_v0  ;;  %1631 = vmatpush3.bf16.msra.mxu1 %v2123_v38 }
  0x49   :  { %1656 = vmatprep.subr.bf16.mxu1 %v1911_v0 }
  0x4b   :  { %1646 = vmatpush3.bf16.msra.mxu0 %v2076_v29 }
  0x4c   :  { %1647 = vmatprep.subr.bf16.mxu0 %v1911_v0 }
  0x4f   :  { %1649 = vmatpush3.bf16.msra.mxu0 %v2099_v32 }
  0x50   :  { %1650 = vmatprep.subr.bf16.mxu0 %v1911_v0 }
  0x53   :  { %1652 = vmatpush3.bf16.msra.mxu0 %v2111_v35 }
  0x54   :  { %1653 = vmatprep.subr.bf16.mxu0 %v1911_v0 }
  0x57   :  { %1655 = vmatpush3.bf16.msra.mxu0 %v2123_v38 }
  0x58   :  { %1451 = vmatprep.subr.mxu0 %v1913_v1 }
 0x10d   :  { %v2132_v41 = vpop.f32.mrb[0].mxu0 }
 0x10e   :  { %v149_v42 = vsel %vm148_vm2, %v2132_v41, 0.0  ;;  %v1345_v43 = vpop.f32.mrb[1].mxu0 }
 0x10f   :  { %v150_v44 = vrot.slane %v149_v42, 4  ;;  %v242_v45 = vmul.f32 %v149_v42, %v149_v42 }
 0x111   :  { %v151_v46 = vadd.f32 %v150_v44, %v149_v42  ;;  %v243_v47 = vrot.slane %v242_v45, 4  ;;  %v497_v42 = vld [vmem:[%s2607_s5 + $0x78] sm:$0xff]  ;;  %v576_v44 = vld [vmem:[#allocation2] sm:$0xff] }
 0x112   :  { %v1678_v43 = vpack.c.bf16 %v497_v42, %v496_v39 }
 0x113   :  { %v152_v48 = vrot.slane %v151_v46, 2  ;;  %v244_v49 = vadd.f32 %v243_v47, %v242_v45 }
 0x115   :  { %v245_v50 = vrot.slane %v244_v49, 2  ;;  %v153_v51 = vadd.f32 %v152_v48, %v151_v46 }
 0x117   :  { %v246_v52 = vadd.f32 %v245_v50, %v244_v49  ;;  %v154_v53 = vrot.slane %v153_v51, 1 }
 0x119   :  { %v155_v54 = vadd.f32 %v154_v53, %v153_v51  ;;  %v247_v55 = vrot.slane %v246_v52, 1 }
 0x11b   :  { %1379 = vmatmul.mubr.f32.vlgmr.msra.gmra.mrb[0].mxu1 %v155_v54  ;;  %v248_v56 = vadd.f32 %v247_v55, %v246_v52 }
 0x11c   :  { %1448 = vmatprep.mubr.msk.f32.mxu1 %vm1912_vm0, %v1913_v1  ;;  %1658 = vmatpush3.bf16.msra.mxu1 %v1657_v12 }
 0x11d   :  { %1414 = vmatmul.mubr.f32.vlgmr.msra.gmra.mrb[2].mxu0 %v248_v56  ;;  %1659 = vmatprep.subr.bf16.mxu1 %v1911_v0 }
 0x11e   :  { %1453 = vmatprep.mubr.msk.f32.mxu0 %vm1912_vm0, %v1913_v1 }
 0x120   :  { %1661 = vmatpush3.bf16.msra.mxu1 %v1660_v17 }
 0x121   :  { %1662 = vmatprep.subr.bf16.mxu1 %v1911_v0 }
 0x124   :  { %1664 = vmatpush3.bf16.msra.mxu1 %v1663_v20 }
 0x125   :  { %1665 = vmatprep.subr.bf16.mxu1 %v1911_v0 }
 0x128   :  { %1667 = vmatpush3.bf16.msra.mxu1 %v1666_v24 }
 0x129   :  { %1668 = vmatprep.subr.bf16.mxu1 %v1911_v0 }
 0x12c   :  { %1670 = vmatpush3.bf16.msra.mxu1 %v1669_v28 }
 0x12d   :  { %1671 = vmatprep.subr.bf16.mxu1 %v1911_v0 }
 0x130   :  { %1673 = vmatpush3.bf16.msra.mxu1 %v1672_v33 }
 0x131   :  { %1674 = vmatprep.subr.bf16.mxu1 %v1911_v0 }
 0x134   :  { %1676 = vmatpush3.bf16.msra.mxu1 %v1675_v37 }
 0x135   :  { %1677 = vmatprep.subr.bf16.mxu1 %v1911_v0 }
 0x138   :  { %1679 = vmatpush3.bf16.msra.mxu1 %v1678_v43 }
 0x139   :  { %1704 = vmatprep.subr.bf16.mxu1 %v1911_v0 }
 0x1ee   :  { %v238_v57 = vpop.f32.mrb[0].mxu1 }
 0x1ef   :  { %v319_v58 = vmul.f32 0.03125, %v238_v57  ;;  %v1380_v59 = vpop.f32.mrb[1].mxu1 }
 0x1f0   :  { %v315_v60 = vpop.f32.mrb[2].mxu0 }
 0x1f1   :  { %v321_v61 = vmul.f32 %v319_v58, %v319_v58  ;;  %v320_v62 = vmul.f32 0.03125, %v315_v60  ;;  %v1415_v63 = vpop.f32.mrb[3].mxu0 }
 0x1f3   :  { %v322_v2 = vsub.f32 %v320_v62, %v321_v61 }
 0x1f5   :  { %v323_v3 = vadd.f32 1e-05, %v322_v2 }
 0x1f7   :  { %1799 = vrsqrt.f32 %v323_v3 }
 0x201   :  { %v1800_v5 = vpop.eup %1799 }
 0x202   :  { %v2147_v6 = vmul.f32 %v1800_v5, %v2144_v4 }
 0x204   :  { %338 = vrot.lane.b32.xlu1 %v2147_v6, %s1914_s30  ;;  %332 = vrot.lane.b32.xlu0 %v2147_v6, %s1910_s14  ;;  %v326_v7 = vmul.f32 %v2147_v6, %v319_v58 }
 0x206   :  { %v328_v8 = vrot.slane %v326_v7, 7 }
 0x208   :  { %335 = vrot.lane.b32.xlu0 %v2147_v6, %s1915_s11  ;;  %v2157_v9 = vsub.f32 %v2144_v4, %v328_v8 }
 0x20a   :  { %412 = vrot.lane.b32.xlu1 %v2157_v9, %s1910_s14 }
 0x20c   :  { %341 = vrot.lane.b32.xlu0 %v2147_v6, %s1916_s4 }
 0x20e   :  { %415 = vrot.lane.b32.xlu1 %v2157_v9, %s1915_s11 }
 0x210   :  { %344 = vrot.lane.b32.xlu0 %v2147_v6, %s1917_s12 }
 0x212   :  { %418 = vrot.lane.b32.xlu1 %v2157_v9, %s1914_s30 }
 0x214   :  { %347 = vrot.lane.b32.xlu0 %v2147_v6, %s1918_s13 }
 0x216   :  { %421 = vrot.lane.b32.xlu1 %v2157_v9, %s1916_s4 }
 0x218   :  { %350 = vrot.lane.b32.xlu0 %v2147_v6, %s1919_s15 }
 0x21a   :  { %424 = vrot.lane.b32.xlu1 %v2157_v9, %s1917_s12 }
 0x21c   :  { %353 = vrot.lane.b32.xlu0 %v2147_v6, %s1920_s1 }
 0x21e   :  { %427 = vrot.lane.b32.xlu1 %v2157_v9, %s1918_s13 }
 0x220   :  { %356 = vrot.lane.b32.xlu0 %v2147_v6, %s1921_s17 }
 0x222   :  { %430 = vrot.lane.b32.xlu1 %v2157_v9, %s1919_s15 }
 0x224   :  { %359 = vrot.lane.b32.xlu0 %v2147_v6, %s1922_s18 }
 0x226   :  { %433 = vrot.lane.b32.xlu1 %v2157_v9, %s1920_s1 }
 0x228   :  { %362 = vrot.lane.b32.xlu0 %v2147_v6, %s1923_s20 }
 0x22a   :  { %436 = vrot.lane.b32.xlu1 %v2157_v9, %s1921_s17 }
 0x22c   :  { %365 = vrot.lane.b32.xlu0 %v2147_v6, %s1924_s25 }
 0x22e   :  { %439 = vrot.lane.b32.xlu1 %v2157_v9, %s1922_s18 }
 0x230   :  { %368 = vrot.lane.b32.xlu0 %v2147_v6, %s1925_s29 }
 0x232   :  { %442 = vrot.lane.b32.xlu1 %v2157_v9, %s1923_s20 }
 0x234   :  { %371 = vrot.lane.b32.xlu0 %v2147_v6, %s1926_s21 }
 0x236   :  { %445 = vrot.lane.b32.xlu1 %v2157_v9, %s1924_s25 }
 0x238   :  { %374 = vrot.lane.b32.xlu0 %v2147_v6, %s1927_s27 }
 0x23a   :  { %448 = vrot.lane.b32.xlu1 %v2157_v9, %s1925_s29 }
 0x23c   :  { %451 = vrot.lane.b32.xlu0 %v2157_v9, %s1926_s21 }
 0x23e   :  { %454 = vrot.lane.b32.xlu1 %v2157_v9, %s1927_s27 }
 0x240   :  { %578 = vrot.lane.b32.xlu0 %v576_v44, %s1910_s14  ;;  %v408_v44 = vsub.s32 0, %v2129_v40 }
 0x276   :  { %v333_v45 = vpop.permute.xlu0 %332  ;;  %v339_v46 = vpop.permute.xlu1 %338 }
 0x277   :  { %v378_v2 = vsel %vm377_vm3, %v2147_v6, %v333_v45 }
 0x27a   :  { %v336_v47 = vpop.permute.xlu0 %335 }
 0x27b   :  { %v380_v3 = vsel %vm379_vm4, %v378_v2, %v336_v47 }
 0x27c   :  { %v413_v48 = vpop.permute.xlu1 %412  ;;  %v382_v8 = vsel %vm381_vm5, %v380_v3, %v339_v46  ;;  %v500_v3 = vsub.s32 4, %v2129_v40 }
 0x27d   :  { %v457_v12 = vsel %vm377_vm3, %v2157_v9, %v413_v48 }
 0x27e   :  { %v342_v49 = vpop.permute.xlu0 %341 }
 0x27f   :  { %v384_v10 = vsel %vm383_vm6, %v382_v8, %v342_v49 }
 0x280   :  { %v416_v50 = vpop.permute.xlu1 %415 }
 0x281   :  { %v458_v6 = vsel %vm379_vm4, %v457_v12, %v416_v50 }
 0x282   :  { %v345_v51 = vpop.permute.xlu0 %344 }
 0x283   :  { %v386_v14 = vsel %vm2613_vm7, %v384_v10, %v345_v51 }
 0x284   :  { %v419_v52 = vpop.permute.xlu1 %418 }
 0x285   :  { %v459_v18 = vsel %vm381_vm5, %v458_v6, %v419_v52 }
 0x286   :  { %v348_v53 = vpop.permute.xlu0 %347 }
 0x287   :  { %v388_v16 = vsel %vm387_vm8, %v386_v14, %v348_v53  ;;  %v474_v53 = vsub.s32 1, %v2129_v40 }
 0x288   :  { %v422_v54 = vpop.permute.xlu1 %421 }
 0x289   :  { %v460_v20 = vsel %vm383_vm6, %v459_v18, %v422_v54  ;;  %v666_v18 = vld [vmem:[%s2609_s7 + $0x8] sm:$0xff] }
 0x28a   :  { %v351_v55 = vpop.permute.xlu0 %350 }
 0x28b   :  { %v390_v19 = vsel %vm389_vm9, %v388_v16, %v351_v55 }
 0x28c   :  { %v425_v56 = vpop.permute.xlu1 %424 }
 0x28d   :  { %v461_v9 = vsel %vm2613_vm7, %v460_v20, %v425_v56  ;;  %vm404_vm7 = vcmask 982016  }
 0x28e   :  { %v354_v57 = vpop.permute.xlu0 %353 }
 0x28f   :  { %v391_v22 = vsel %vm72_vm1, %v390_v19, %v354_v57 }
 0x290   :  { %v428_v58 = vpop.permute.xlu1 %427 }
 0x291   :  { %v462_v26 = vsel %vm387_vm8, %v461_v9, %v428_v58  ;;  %v668_v9 = vld [vmem:[%s2609_s7 + $0x18] sm:$0xff] }
 0x292   :  { %v357_v59 = vpop.permute.xlu0 %356 }
 0x293   :  { %v393_v24 = vsel %vm392_vm10, %v391_v22, %v357_v59 }
 0x294   :  { %v431_v60 = vpop.permute.xlu1 %430 }
 0x295   :  { %v463_v30 = vsel %vm389_vm9, %v462_v26, %v431_v60  ;;  %v669_v26 = vld [vmem:[%s2609_s7 + $0x20] sm:$0xff] }
 0x296   :  { %v360_v61 = vpop.permute.xlu0 %359 }
 0x297   :  { %v395_v27 = vsel %vm394_vm11, %v393_v24, %v360_v61 }
 0x298   :  { %v434_v62 = vpop.permute.xlu1 %433 }
 0x299   :  { %v464_v33 = vsel %vm72_vm1, %v463_v30, %v434_v62  ;;  %v671_v30 = vld [vmem:[%s2609_s7 + $0x30] sm:$0xff] }
 0x29a   :  { %v363_v63 = vpop.permute.xlu0 %362 }
 0x29b   :  { %v397_v31 = vsel %vm396_vm12, %v395_v27, %v363_v63  ;;  %v670_v27 = vld [vmem:[%s2609_s7 + $0x28] sm:$0xff] }
 0x29c   :  { %v437_v5 = vpop.permute.xlu1 %436 }
 0x29d   :  { %v465_v37 = vsel %vm392_vm10, %v464_v33, %v437_v5  ;;  %v501_v5 = vrot.slane %v2144_v4, %v500_v3 }
 0x29e   :  { %v366_v7 = vpop.permute.xlu0 %365 }
 0x29f   :  { %v399_v34 = vsel %vm398_vm13, %v397_v31, %v366_v7  ;;  %v672_v31 = vld [vmem:[%s2609_s7 + $0x38] sm:$0xff] }
 0x2a0   :  { %v440_v11 = vpop.permute.xlu1 %439  ;;  %v1690_v33 = vpack.c.bf16 %v672_v31, %v671_v30  ;;  %v1079_v30 = vld [vmem:[%s2610_s8 + $0x30] sm:$0xff]  ;;  %v1080_v31 = vld [vmem:[%s2610_s8 + $0x38] sm:$0xff] }
 0x2a1   :  { %v466_v42 = vsel %vm394_vm11, %v465_v37, %v440_v11 }
 0x2a2   :  { %v369_v17 = vpop.permute.xlu0 %368 }
 0x2a3   :  { %v401_v39 = vsel %vm400_vm14, %v399_v34, %v369_v17  ;;  %v665_v17 = vld [vmem:[%s2609_s7] sm:$0xff] }
 0x2a4   :  { %v443_v23 = vpop.permute.xlu1 %442  ;;  %v1681_v20 = vpack.c.bf16 %v666_v18, %v665_v17  ;;  %v673_v34 = vld [vmem:[%s2609_s7 + $0x40] sm:$0xff] }
 0x2a5   :  { %v467_v46 = vsel %vm396_vm12, %v466_v42, %v443_v23  ;;  %v667_v23 = vld [vmem:[%s2609_s7 + $0x10] sm:$0xff]  ;;  %v676_v42 = vld [vmem:[%s2609_s7 + $0x58] sm:$0xff] }
 0x2a6   :  { %v372_v28 = vpop.permute.xlu0 %371  ;;  %v1684_v24 = vpack.c.bf16 %v668_v9, %v667_v23  ;;  %v1075_v23 = vld [vmem:[%s2610_s8 + $0x10] sm:$0xff]  ;;  %v1076_v9 = vld [vmem:[%s2610_s8 + $0x18] sm:$0xff] }
 0x2a7   :  { %v403_v43 = vsel %vm402_vm15, %v401_v39, %v372_v28  ;;  %v1687_v28 = vpack.c.bf16 %v670_v27, %v669_v26  ;;  %v675_v39 = vld [vmem:[%s2609_s7 + $0x50] sm:$0xff]  ;;  %v1077_v26 = vld [vmem:[%s2610_s8 + $0x20] sm:$0xff]  ;;  %v1078_v27 = vld [vmem:[%s2610_s8 + $0x28] sm:$0xff] }
 0x2a8   :  { %v446_v36 = vpop.permute.xlu1 %445 }
 0x2a9   :  { %v468_v48 = vsel %vm398_vm13, %v467_v46, %v446_v36  ;;  %v674_v36 = vld [vmem:[%s2609_s7 + $0x48] sm:$0xff] }
 0x2aa   :  { %v375_v45 = vpop.permute.xlu0 %374  ;;  %v1693_v37 = vpack.c.bf16 %v674_v36, %v673_v34  ;;  %v678_v46 = vld [vmem:[%s2609_s7 + $0x68] sm:$0xff]  ;;  %v1081_v34 = vld [vmem:[%s2610_s8 + $0x40] sm:$0xff] }
 0x2ab   :  { %v405_v47 = vsel %vm404_vm7, %v403_v43, %v375_v45  ;;  %v1696_v43 = vpack.c.bf16 %v676_v42, %v675_v39  ;;  %v677_v45 = vld [vmem:[%s2609_s7 + $0x60] sm:$0xff]  ;;  %v1082_v36 = vld [vmem:[%s2610_s8 + $0x48] sm:$0xff]  ;;  %v1083_v39 = vld [vmem:[%s2610_s8 + $0x50] sm:$0xff] }
 0x2ac   :  { %v449_v49 = vpop.permute.xlu1 %448  ;;  %v409_v51 = vrot.slane %v405_v47, %v408_v44  ;;  %v1699_v47 = vpack.c.bf16 %v678_v46, %v677_v45  ;;  %v1084_v42 = vld [vmem:[%s2610_s8 + $0x58] sm:$0xff]  ;;  %v1085_v45 = vld [vmem:[%s2610_s8 + $0x60] sm:$0xff]  ;;  %v1086_v46 = vld [vmem:[%s2610_s8 + $0x68] sm:$0xff] }
 0x2ad   :  { %v469_v50 = vsel %vm400_vm14, %v468_v48, %v449_v49  ;;  %v679_v48 = vld [vmem:[%s2609_s7 + $0x70] sm:$0xff]  ;;  %v680_v49 = vld [vmem:[%s2609_s7 + $0x78] sm:$0xff] }
 0x2ae   :  { %v452_v52 = vpop.permute.xlu0 %451  ;;  %v410_v57 = vmul.f32 %v409_v51, %v2132_v41  ;;  %v587_v41 = vld [vmem:[%s2608_s6] sm:$0xff]  ;;  %v590_v51 = vsub.s32 5, %v2129_v40 }
 0x2af   :  { %v470_v54 = vsel %vm402_vm15, %v469_v50, %v452_v52  ;;  %1452 = vmatpush3.msra.mxu0 %v587_v41  ;;  %v1702_v50 = vpack.c.bf16 %v680_v49, %v679_v48  ;;  %v1087_v48 = vld [vmem:[%s2610_s8 + $0x70] sm:$0xff]  ;;  %v1088_v49 = vld [vmem:[%s2610_s8 + $0x78] sm:$0xff] }
 0x2b0   :  { %v455_v55 = vpop.permute.xlu1 %454  ;;  %1680 = vmatprep.subr.bf16.mxu0 %v1911_v0  ;;  %v591_v52 = vrot.slane %v2144_v4, %v590_v51 }
 0x2b1   :  { %v471_v56 = vsel %vm404_vm7, %v470_v54, %v455_v55 }
 0x2b2   :  { %v475_v58 = vrot.slane %v471_v56, %v474_v53  ;;  %v579_v14 = vpop.permute.xlu0 %578 }
 0x2b4   :  { %v476_v59 = vadd.f32 %v475_v58, %v410_v57 }
 0x2b6   :  { %v478_v60 = vmul.f32 0.70710677, %v476_v59  ;;  %v477_v62 = vmul.f32 0.5, %v476_v59 }
 0x2b8   :  { %1801 = verf.f32 %v478_v60 }
 0x2c2   :  { %v1802_v61 = vpop.eup %1801 }
 0x2c3   :  { %v480_v63 = vadd.f32 1.0, %v1802_v61 }
 0x2c5   :  { %v481_v2 = vmul.f32 %v480_v63, %v477_v62 }
 0x2c7   :  { %1449 = vmatmul.mubr.f32.vlgmr.msra.gmra.mrb[2].mxu1 %v481_v2 }
 0x2c8   :  { %1706 = vmatpush3.bf16.msra.mxu1 %v2033_v13  ;;  %1523 = vmatprep.mubr.msk.f32.mxu1 %vm1912_vm0, %v1913_v1 }
 0x2c9   :  { %1707 = vmatprep.subr.bf16.mxu1 %v1911_v0 }
 0x2cc   :  { %1709 = vmatpush3.bf16.msra.mxu1 %v2039_v15 }
 0x2cd   :  { %1710 = vmatprep.subr.bf16.mxu1 %v1911_v0 }
 0x2d0   :  { %1712 = vmatpush3.bf16.msra.mxu1 %v2050_v21 }
 0x2d1   :  { %1713 = vmatprep.subr.bf16.mxu1 %v1911_v0 }
 0x2d4   :  { %1715 = vmatpush3.bf16.msra.mxu1 %v2061_v25 }
 0x2d5   :  { %1716 = vmatprep.subr.bf16.mxu1 %v1911_v0 }
 0x2d8   :  { %1718 = vmatpush3.bf16.msra.mxu1 %v2076_v29 }
 0x2d9   :  { %1719 = vmatprep.subr.bf16.mxu1 %v1911_v0 }
 0x2dc   :  { %1721 = vmatpush3.bf16.msra.mxu1 %v2099_v32 }
 0x2dd   :  { %1722 = vmatprep.subr.bf16.mxu1 %v1911_v0 }
 0x2e0   :  { %1724 = vmatpush3.bf16.msra.mxu1 %v2111_v35 }
 0x2e1   :  { %1725 = vmatprep.subr.bf16.mxu1 %v1911_v0 }
 0x2e4   :  { %1727 = vmatpush3.bf16.msra.mxu1 %v2123_v38 }
 0x2e5   :  { %1752 = vmatprep.subr.bf16.mxu1 %v1911_v0 }
 0x39a   :  { %v568_v7 = vpop.f32.mrb[2].mxu1 }
 0x39b   :  { %v569_v8 = vadd.f32 %v568_v7, %v501_v5  ;;  %v1450_v10 = vpop.f32.mrb[3].mxu1 }
 0x39d   :  { %v573_v11 = vmul.f32 0.5, %v569_v8  ;;  %572 = vst.msk [vmem:[#allocation8] sm:$0xff] %vm379_vm4, %v569_v8 }
 0x39f   :  { %v574_v12 = vmul.f32 1.442695, %v573_v11 }
 0x3a1   :  { %1803 = vpow2.f32 %v574_v12 }
 0x3ab   :  { %v1804_v6 = vpop.eup %1803 }
 0x3ac   :  { %v581_v16 = vmul.f32 %v1804_v6, %v579_v14  ;;  %v928_v14 = vrot.slane %v2144_v4, 2 }
 0x3ae   :  { %583 = vrot.lane.b32.xlu1 %v581_v16, %s1927_s27 }
 0x420   :  { %v584_v19 = vpop.permute.xlu1 %583 }
 0x421   :  { %v586_v22 = vadd.f32 %v584_v19, %v569_v8  ;;  %v1073_v19 = vld [vmem:[%s2610_s8] sm:$0xff] }
 0x423   :  { %1454 = vmatmul.mubr.msk.f32.vlgmr.msra.gmra.mrb[4].mxu0 %vm377_vm3, %v586_v22 }
 0x424   :  { %1682 = vmatpush3.bf16.msra.mxu0 %v1681_v20  ;;  %1488 = vmatprep.mubr.msk.f32.mxu0 %vm1912_vm0, %v1913_v1  ;;  %v1074_v20 = vld [vmem:[%s2610_s8 + $0x8] sm:$0xff]  ;;  %s1928_s8 = smov [#allocation8]  }
 0x425   :  { %1683 = vmatprep.subr.bf16.mxu0 %v1911_v0  ;;  %v1753_v22 = vpack.c.bf16 %v1074_v20, %v1073_v19 }
 0x428   :  { %1685 = vmatpush3.bf16.msra.mxu0 %v1684_v24  ;;  %v1756_v24 = vpack.c.bf16 %v1076_v9, %v1075_v23 }
 0x429   :  { %1686 = vmatprep.subr.bf16.mxu0 %v1911_v0 }
 0x42c   :  { %1688 = vmatpush3.bf16.msra.mxu0 %v1687_v28  ;;  %v1759_v28 = vpack.c.bf16 %v1078_v27, %v1077_v26 }
 0x42d   :  { %1689 = vmatprep.subr.bf16.mxu0 %v1911_v0 }
 0x430   :  { %1691 = vmatpush3.bf16.msra.mxu0 %v1690_v33  ;;  %v1762_v33 = vpack.c.bf16 %v1080_v31, %v1079_v30 }
 0x431   :  { %1692 = vmatprep.subr.bf16.mxu0 %v1911_v0 }
 0x434   :  { %1694 = vmatpush3.bf16.msra.mxu0 %v1693_v37  ;;  %v1765_v37 = vpack.c.bf16 %v1082_v36, %v1081_v34 }
 0x435   :  { %1695 = vmatprep.subr.bf16.mxu0 %v1911_v0 }
 0x438   :  { %1697 = vmatpush3.bf16.msra.mxu0 %v1696_v43  ;;  %v1768_v43 = vpack.c.bf16 %v1084_v42, %v1083_v39 }
 0x439   :  { %1698 = vmatprep.subr.bf16.mxu0 %v1911_v0 }
 0x43c   :  { %1700 = vmatpush3.bf16.msra.mxu0 %v1699_v47  ;;  %v1771_v47 = vpack.c.bf16 %v1086_v46, %v1085_v45 }
 0x43d   :  { %1701 = vmatprep.subr.bf16.mxu0 %v1911_v0 }
 0x440   :  { %1703 = vmatpush3.bf16.msra.mxu0 %v1702_v50  ;;  %v1774_v50 = vpack.c.bf16 %v1088_v49, %v1087_v48  ;;  %v1065_v49 = vsub.s32 3, %v2129_v40 }
 0x441   :  { %1728 = vmatprep.subr.bf16.mxu0 %v1911_v0 }
 0x4f6   :  { %v661_v53 = vpop.f32.mrb[4].mxu0 }
 0x4f7   :  { %v662_v54 = vadd.f32 %v661_v53, %v591_v52  ;;  %v1455_v55 = vpop.f32.mrb[5].mxu0 }
 0x4f9   :  { %1489 = vmatmul.mubr.f32.vlgmr.msra.gmra.mrb[6].mxu0 %v662_v54 }
 0x4fa   :  { %1730 = vmatpush3.bf16.msra.mxu0 %v2033_v13  ;;  %1558 = vmatprep.mubr.msk.f32.mxu0 %vm1912_vm0, %v1913_v1 }
 0x4fb   :  { %1731 = vmatprep.subr.bf16.mxu0 %v1911_v0 }
 0x4fe   :  { %1733 = vmatpush3.bf16.msra.mxu0 %v2039_v15 }
 0x4ff   :  { %1734 = vmatprep.subr.bf16.mxu0 %v1911_v0 }
 0x502   :  { %1736 = vmatpush3.bf16.msra.mxu0 %v2050_v21 }
 0x503   :  { %1737 = vmatprep.subr.bf16.mxu0 %v1911_v0 }
 0x506   :  { %1739 = vmatpush3.bf16.msra.mxu0 %v2061_v25 }
 0x507   :  { %1740 = vmatprep.subr.bf16.mxu0 %v1911_v0 }
 0x50a   :  { %1742 = vmatpush3.bf16.msra.mxu0 %v2076_v29 }
 0x50b   :  { %1743 = vmatprep.subr.bf16.mxu0 %v1911_v0 }
 0x50e   :  { %1745 = vmatpush3.bf16.msra.mxu0 %v2099_v32 }
 0x50f   :  { %1746 = vmatprep.subr.bf16.mxu0 %v1911_v0 }
 0x512   :  { %1748 = vmatpush3.bf16.msra.mxu0 %v2111_v35 }
 0x513   :  { %1749 = vmatprep.subr.bf16.mxu0 %v1911_v0 }
 0x516   :  { %1751 = vmatpush3.bf16.msra.mxu0 %v2123_v38 }
 0x5cc   :  { %v2411_v13 = vpop.f32.mrb[6].mxu0 }
 0x5cd   :  { %v751_v15 = vsel %vm148_vm2, %v2411_v13, 0.0  ;;  %v1490_v21 = vpop.f32.mrb[7].mxu0 }
 0x5ce   :  { %v752_v25 = vrot.slane %v751_v15, 4  ;;  %v844_v29 = vmul.f32 %v751_v15, %v751_v15 }
 0x5d0   :  { %v753_v56 = vadd.f32 %v752_v25, %v751_v15  ;;  %v845_v57 = vrot.slane %v844_v29, 4 }
 0x5d2   :  { %v754_v32 = vrot.slane %v753_v56, 2  ;;  %v846_v58 = vadd.f32 %v845_v57, %v844_v29 }
 0x5d4   :  { %v755_v59 = vadd.f32 %v754_v32, %v753_v56  ;;  %v847_v60 = vrot.slane %v846_v58, 2 }
 0x5d6   :  { %v756_v35 = vrot.slane %v755_v59, 1  ;;  %v848_v61 = vadd.f32 %v847_v60, %v846_v58 }
 0x5d8   :  { %v757_v62 = vadd.f32 %v756_v35, %v755_v59  ;;  %v849_v63 = vrot.slane %v848_v61, 1 }
 0x5da   :  { %1524 = vmatmul.mubr.f32.vlgmr.msra.gmra.mrb[4].mxu1 %v757_v62  ;;  %v850_v38 = vadd.f32 %v849_v63, %v848_v61 }
 0x5db   :  { %1593 = vmatprep.mubr.msk.f32.mxu1 %vm1912_vm0, %v1913_v1  ;;  %1754 = vmatpush3.bf16.msra.mxu1 %v1753_v22  ;;  %vm2614_vm0 = vcmask 326656  }
 0x5dc   :  { %1559 = vmatmul.mubr.f32.vlgmr.msra.gmra.mrb[8].mxu0 %v850_v38  ;;  %1755 = vmatprep.subr.bf16.mxu1 %v1911_v0  ;;  %vm2615_vm2 = vmmov %vm2614_vm0 }
 0x5df   :  { %1757 = vmatpush3.bf16.msra.mxu1 %v1756_v24 }
 0x5e0   :  { %1758 = vmatprep.subr.bf16.mxu1 %v1911_v0 }
 0x5e3   :  { %1760 = vmatpush3.bf16.msra.mxu1 %v1759_v28 }
 0x5e4   :  { %1761 = vmatprep.subr.bf16.mxu1 %v1911_v0 }
 0x5e7   :  { %1763 = vmatpush3.bf16.msra.mxu1 %v1762_v33 }
 0x5e8   :  { %1764 = vmatprep.subr.bf16.mxu1 %v1911_v0 }
 0x5eb   :  { %1766 = vmatpush3.bf16.msra.mxu1 %v1765_v37 }
 0x5ec   :  { %1767 = vmatprep.subr.bf16.mxu1 %v1911_v0 }
 0x5ef   :  { %1769 = vmatpush3.bf16.msra.mxu1 %v1768_v43 }
 0x5f0   :  { %1770 = vmatprep.subr.bf16.mxu1 %v1911_v0 }
 0x5f3   :  { %1772 = vmatpush3.bf16.msra.mxu1 %v1771_v47 }
 0x5f4   :  { %1773 = vmatprep.subr.bf16.mxu1 %v1911_v0 }
 0x5f7   :  { %1775 = vmatpush3.bf16.msra.mxu1 %v1774_v50 }
 0x6ad   :  { %v840_v2 = vpop.f32.mrb[4].mxu1 }
 0x6ae   :  { %v921_v41 = vmul.f32 0.03125, %v840_v2  ;;  %v1525_v3 = vpop.f32.mrb[5].mxu1 }
 0x6af   :  { %v917_v5 = vpop.f32.mrb[8].mxu0 }
 0x6b0   :  { %v923_v7 = vmul.f32 %v921_v41, %v921_v41  ;;  %v922_v8 = vmul.f32 0.03125, %v917_v5  ;;  %v1560_v10 = vpop.f32.mrb[9].mxu0 }
 0x6b2   :  { %v924_v11 = vsub.f32 %v922_v8, %v923_v7 }
 0x6b4   :  { %v925_v12 = vadd.f32 1e-05, %v924_v11 }
 0x6b6   :  { %1805 = vrsqrt.f32 %v925_v12 }
 0x6c0   :  { %v1806_v6 = vpop.eup %1805 }
 0x6c1   :  { %v2419_v16 = vmul.f32 %v1806_v6, %v928_v14 }
 0x6c3   :  { %940 = vrot.lane.b32.xlu1 %v2419_v16, %s1915_s11  ;;  %937 = vrot.lane.b32.xlu0 %v2419_v16, %s1910_s14  ;;  %v931_v1 = vmul.f32 %v2419_v16, %v921_v41 }
 0x6c5   :  { %v933_v17 = vrot.slane %v931_v1, 5 }
 0x6c7   :  { %943 = vrot.lane.b32.xlu0 %v2419_v16, %s1914_s30  ;;  %v2429_v18 = vsub.f32 %v2144_v4, %v933_v17 }
 0x6c9   :  { %1003 = vrot.lane.b32.xlu1 %v2429_v18, %s1910_s14 }
 0x6cb   :  { %946 = vrot.lane.b32.xlu0 %v2419_v16, %s1916_s4 }
 0x6cd   :  { %1006 = vrot.lane.b32.xlu1 %v2429_v18, %s1915_s11 }
 0x6cf   :  { %949 = vrot.lane.b32.xlu0 %v2419_v16, %s1917_s12 }
 0x6d1   :  { %1009 = vrot.lane.b32.xlu1 %v2429_v18, %s1914_s30 }
 0x6d3   :  { %952 = vrot.lane.b32.xlu0 %v2419_v16, %s1918_s13 }
 0x6d5   :  { %1012 = vrot.lane.b32.xlu1 %v2429_v18, %s1916_s4 }
 0x6d7   :  { %955 = vrot.lane.b32.xlu0 %v2419_v16, %s1919_s15 }
 0x6d9   :  { %1015 = vrot.lane.b32.xlu1 %v2429_v18, %s1917_s12 }
 0x6db   :  { %958 = vrot.lane.b32.xlu0 %v2419_v16, %s1920_s1 }
 0x6dd   :  { %1018 = vrot.lane.b32.xlu1 %v2429_v18, %s1918_s13 }
 0x6df   :  { %961 = vrot.lane.b32.xlu0 %v2419_v16, %s1921_s17 }
 0x6e1   :  { %1021 = vrot.lane.b32.xlu1 %v2429_v18, %s1919_s15 }
 0x6e3   :  { %964 = vrot.lane.b32.xlu0 %v2419_v16, %s1922_s18 }
 0x6e5   :  { %1024 = vrot.lane.b32.xlu1 %v2429_v18, %s1920_s1 }
 0x6e7   :  { %967 = vrot.lane.b32.xlu0 %v2419_v16, %s1923_s20 }
 0x6e9   :  { %1027 = vrot.lane.b32.xlu1 %v2429_v18, %s1921_s17 }
 0x6eb   :  { %970 = vrot.lane.b32.xlu0 %v2419_v16, %s1924_s25 }
 0x6ed   :  { %1030 = vrot.lane.b32.xlu1 %v2429_v18, %s1922_s18 }
 0x6ef   :  { %973 = vrot.lane.b32.xlu0 %v2419_v16, %s1925_s29 }
 0x6f1   :  { %1033 = vrot.lane.b32.xlu1 %v2429_v18, %s1923_s20 }
 0x6f3   :  { %976 = vrot.lane.b32.xlu0 %v2419_v16, %s1926_s21 }
 0x6f5   :  { %1036 = vrot.lane.b32.xlu1 %v2429_v18, %s1924_s25 }
 0x6f7   :  { %979 = vrot.lane.b32.xlu0 %v2419_v16, %s1927_s27 }
 0x6f9   :  { %1039 = vrot.lane.b32.xlu1 %v2429_v18, %s1925_s29  ;;  %s1181_s29 = sshll.u32 %s1928_s8, 4  ;;  %s1182_s29 = int_to_ptr.vmem [resolvable:$true] %s1181_s29 }
 0x6fa   :  { %p1860_p3 = scmp.lt.s32.totalorder %s1182_s29, %s1182_s29 }
 0x6fb   :  { %1042 = vrot.lane.b32.xlu0 %v2429_v18, %s1926_s21  ;;  %s1855_s21 = scalar_lea.vmem %s1182_s29, 128 }
 0x6fc   :  { %p1856_p2 = scmp.ne.s32.totalorder %s1182_s29, %s1855_s21  ;;  %p1861_p4 = scmp.lt.s32.totalorder %s1855_s21, %s1855_s21 }
 0x6fd   :  { %1045 = vrot.lane.b32.xlu1 %v2429_v18, %s1927_s27 }
 0x6fe   :  { %p1862_p5 = por %p1861_p4, %p1860_p3 }
 0x700   :  { %p1863_p6 = pnand %p1862_p5, %p1856_p2 }
 0x735   :  { %v938_v51 = vpop.permute.xlu0 %937  ;;  %v941_v52 = vpop.permute.xlu1 %940 }
 0x736   :  { %v982_v63 = vsel %vm377_vm3, %v2419_v16, %v938_v51 }
 0x737   :  { %v983_v2 = vsel %vm379_vm4, %v982_v63, %v941_v52 }
 0x739   :  { %v944_v53 = vpop.permute.xlu0 %943 }
 0x73a   :  { %v984_v3 = vsel %vm381_vm5, %v983_v2, %v944_v53 }
 0x73b   :  { %v1004_v54 = vpop.permute.xlu1 %1003 }
 0x73c   :  { %v1048_v8 = vsel %vm377_vm3, %v2429_v18, %v1004_v54 }
 0x73d   :  { %v947_v55 = vpop.permute.xlu0 %946 }
 0x73e   :  { %v985_v5 = vsel %vm383_vm6, %v984_v3, %v947_v55 }
 0x73f   :  { %v1007_v15 = vpop.permute.xlu1 %1006 }
 0x740   :  { %v1049_v11 = vsel %vm379_vm4, %v1048_v8, %v1007_v15 }
 0x741   :  { %v950_v21 = vpop.permute.xlu0 %949 }
 0x742   :  { %v986_v10 = vsel %vm2614_vm0, %v985_v5, %v950_v21 }
 0x743   :  { %v1010_v25 = vpop.permute.xlu1 %1009 }
 0x744   :  { %v1050_v6 = vsel %vm381_vm5, %v1049_v11, %v1010_v25 }
 0x745   :  { %v953_v29 = vpop.permute.xlu0 %952 }
 0x746   :  { %v987_v12 = vsel %vm387_vm8, %v986_v10, %v953_v29 }
 0x747   :  { %v1013_v56 = vpop.permute.xlu1 %1012 }
 0x748   :  { %v1051_v1 = vsel %vm383_vm6, %v1050_v6, %v1013_v56 }
 0x749   :  { %v956_v57 = vpop.permute.xlu0 %955 }
 0x74a   :  { %v988_v16 = vsel %vm389_vm9, %v987_v12, %v956_v57 }
 0x74b   :  { %v1016_v32 = vpop.permute.xlu1 %1015 }
 0x74c   :  { %v1052_v20 = vsel %vm2615_vm2, %v1051_v1, %v1016_v32 }
 0x74d   :  { %v959_v58 = vpop.permute.xlu0 %958 }
 0x74e   :  { %v989_v17 = vsel %vm72_vm1, %v988_v16, %v959_v58 }
 0x74f   :  { %v1019_v59 = vpop.permute.xlu1 %1018 }
 0x750   :  { %v1053_v22 = vsel %vm387_vm8, %v1052_v20, %v1019_v59 }
 0x751   :  { %v962_v60 = vpop.permute.xlu0 %961 }
 0x752   :  { %v990_v18 = vsel %vm392_vm10, %v989_v17, %v962_v60 }
 0x753   :  { %v1022_v35 = vpop.permute.xlu1 %1021 }
 0x754   :  { %v1054_v24 = vsel %vm389_vm9, %v1053_v22, %v1022_v35 }
 0x755   :  { %v965_v61 = vpop.permute.xlu0 %964 }
 0x756   :  { %v991_v23 = vsel %vm394_vm11, %v990_v18, %v965_v61 }
 0x757   :  { %v1025_v62 = vpop.permute.xlu1 %1024 }
 0x758   :  { %v1055_v27 = vsel %vm72_vm1, %v1054_v24, %v1025_v62 }
 0x759   :  { %v968_v0 = vpop.permute.xlu0 %967 }
 0x75a   :  { %v992_v26 = vsel %vm396_vm12, %v991_v23, %v968_v0 }
 0x75b   :  { %v1028_v38 = vpop.permute.xlu1 %1027 }
 0x75c   :  { %v1056_v31 = vsel %vm392_vm10, %v1055_v27, %v1028_v38 }
 0x75d   :  { %v971_v41 = vpop.permute.xlu0 %970 }
 0x75e   :  { %v993_v28 = vsel %vm398_vm13, %v992_v26, %v971_v41 }
 0x75f   :  { %v1031_v7 = vpop.permute.xlu1 %1030 }
 0x760   :  { %v1057_v34 = vsel %vm394_vm11, %v1056_v31, %v1031_v7 }
 0x761   :  { %v974_v14 = vpop.permute.xlu0 %973 }
 0x762   :  { %v994_v33 = vsel %vm400_vm14, %v993_v28, %v974_v14 }
 0x763   :  { %v1034_v19 = vpop.permute.xlu1 %1033 }
 0x764   :  { %v1058_v39 = vsel %vm396_vm12, %v1057_v34, %v1034_v19 }
 0x765   :  { %v977_v9 = vpop.permute.xlu0 %976 }
 0x766   :  { %v995_v36 = vsel %vm402_vm15, %v994_v33, %v977_v9 }
 0x767   :  { %v1037_v30 = vpop.permute.xlu1 %1036 }
 0x768   :  { %v1059_v43 = vsel %vm398_vm13, %v1058_v39, %v1037_v30 }
 0x769   :  { %v980_v37 = vpop.permute.xlu0 %979 }
 0x76a   :  { %v996_v42 = vsel %vm404_vm7, %v995_v36, %v980_v37 }
 0x76b   :  { %v1040_v45 = vpop.permute.xlu1 %1039  ;;  %v1000_v47 = vrot.slane %v996_v42, %v408_v44 }
 0x76c   :  { %v1060_v46 = vsel %vm400_vm14, %v1059_v43, %v1040_v45 }
 0x76d   :  { %v1043_v48 = vpop.permute.xlu0 %1042  ;;  %v1001_v53 = vmul.f32 %v1000_v47, %v2411_v13 }
 0x76e   :  { %v1061_v50 = vsel %vm402_vm15, %v1060_v46, %v1043_v48 }
 0x76f   :  { %v1046_v51 = vpop.permute.xlu1 %1045 }
 0x770   :  { %v1062_v52 = vsel %vm404_vm7, %v1061_v50, %v1046_v51 }
 0x771   :  { %v1066_v54 = vrot.slane %v1062_v52, %v1065_v49 }
 0x773   :  { %v1067_v55 = vadd.f32 %v1066_v54, %v1001_v53 }
 0x775   :  { %v1069_v15 = vmul.f32 0.70710677, %v1067_v55  ;;  %v1068_v25 = vmul.f32 0.5, %v1067_v55 }
 0x777   :  { %1807 = verf.f32 %v1069_v15 }
 0x781   :  { %v1808_v21 = vpop.eup %1807 }
 0x782   :  { %v1071_v29 = vadd.f32 1.0, %v1808_v21 }
 0x784   :  { %v1072_v56 = vmul.f32 %v1071_v29, %v1068_v25 }
 0x786   :  { %1594 = vmatmul.mubr.f32.vlgmr.msra.gmra.mrb[6].mxu1 %v1072_v56 }
 0x787   :  { %1866 = shalt.err (!%p1863_p6)
}
 0x788   :  { %s1867_s1 = scalar_lea.hbm %s2612_s10, 128 }
 0x789   :  { %p1868_p7 = scmp.ne.s32.totalorder %s2612_s10, %s1867_s1  ;;  %p1871_p8 = scmp.lt.u32.totalorder %s1867_s1, %s2612_s10 }
 0x78b   :  { %p1873_p9 = pnand %p1871_p8, %p1868_p7 }
 0x78d   :  { %1876 = shalt.err (!%p1873_p9)
}
 0x78e   :  { %1184 = dma.vmem_to_hbm [thread:$0]  %s1182_s29, 128, %s2612_s10, [#allocation9]   ;;  %v1091_v44 = vsub.s32 6, %v2129_v40 }
 0x78f   :  { %s1929_s0 = smov [#allocation7]  }
 0x790   :  { %v1092_v13 = vrot.slane %v2144_v4, %v1091_v44  ;;  %s1171_s18 = sshll.u32 %s1929_s0, 4  ;;  %s1172_s18 = int_to_ptr.vmem [resolvable:$true] %s1171_s18 }
 0x791   :  { %s1877_s16 = scalar_lea.vmem %s1172_s18, 128  ;;  %p1882_p11 = scmp.lt.s32.totalorder %s1172_s18, %s1172_s18 }
 0x792   :  { %p1878_p10 = scmp.ne.s32.totalorder %s1172_s18, %s1877_s16  ;;  %p1883_p12 = scmp.lt.s32.totalorder %s1877_s16, %s1877_s16 }
 0x794   :  { %p1884_p13 = por %p1883_p12, %p1882_p11 }
 0x796   :  { %p1885_p0 = pnand %p1884_p13, %p1878_p10 }
 0x859   :  { %v1159_v57 = vpop.f32.mrb[6].mxu1 }
 0x85a   :  { %v1160_v32 = vadd.f32 %v1159_v57, %v1092_v13  ;;  %v1595_v58 = vpop.f32.mrb[7].mxu1 }
 0x85c   :  { %1809 = vtanh.f32 %v1160_v32 }
 0x866   :  { %v1810_v59 = vpop.eup %1809 }
 0x867   :  { %1164 = vst [vmem:[#allocation7] sm:$0xff] %v1810_v59 }
 0x868   :  { %1888 = shalt.err (!%p1885_p0)
}
 0x869   :  { %s1889_s22 = scalar_lea.hbm %s2611_s9, 128 }
 0x86a   :  { %p1890_p1 = scmp.ne.s32.totalorder %s2611_s9, %s1889_s22  ;;  %p1893_p2 = scmp.lt.u32.totalorder %s1889_s22, %s2611_s9 }
 0x86c   :  { %p1895_p3 = pnand %p1893_p2, %p1890_p1 }
 0x86e   :  { %1898 = shalt.err (!%p1895_p3)
}
 0x86f   :  { %1174 = dma.vmem_to_hbm [thread:$0]  %s1172_s18, 128, %s2611_s9, [#allocation4]  }
 0x870   :  { %1903 = dma.done.wait [#allocation4], 128  }
 0x871   :  { %1904 = vsyncadd [#allocation4], 4294967168 }
 0x872   :  { %1905 = dma.done.wait [#allocation9], 128  }
 0x873   :  { %1906 = vsyncadd [#allocation9], 4294967168 }
 0x874   :  { %1191 = vsyncpa [#allocation3], 1 }
 0x875   :  { %1192 = vsyncpa [#allocation6], 1 }
 0x876   :  { %1193 = vsyncpa [#allocation4], 1 }
 0x877   :  { %1194 = vsyncpa [#allocation9], 1 }

</bundles_post_ra>
